<compile_context>
chip_gen: v5e
topology: v5e:2x2
jax: 0.10.0
libtpu: 0.0.40
codegen_flags: <defaults>
</compile_context>

<pallas_src>
import functools

import jax
import jax.numpy as jnp
from jax.experimental import pallas as pl
from jax.experimental.pallas import tpu as pltpu

LEAKY_SLOPE = 0.2
LANE = 128            # lane width: pad feature dims to multiples of this
SUBLANE = 8           # sublane width: batch tiles are multiples of this
MAX_BATCH_TILE = 1024 # ~2-4 MiB of activations per step: amortizes per-step
                      # overhead while staying far below the VMEM limit


def _round_up(x, m):
    return ((x + m - 1) // m) * m


def _choose_batch_tile(B, max_tile=MAX_BATCH_TILE):
    """Pick a batch tile: <= max_tile, multiple of 8, and such that the grid
    has >= 2 roughly-equal steps whenever B is non-trivial (v7x has 2 TCs)."""
    B_up = _round_up(B, SUBLANE)
    if B_up <= 2 * SUBLANE:               # tiny batch: single grid step
        return B_up
    n_tiles = max(2, pl.cdiv(B_up, max_tile))
    return min(max_tile, _round_up(pl.cdiv(B_up, n_tiles), SUBLANE))


# ----------------------------------------------------------------------------
# Fused multi-stage MLP kernel.  All layers of all stages run in one kernel
# invocation; weights stay resident in VMEM, the grid iterates over batch
# tiles only.  One output per stage (the stage's final linear activation,
# sliced to its logical width).
# ----------------------------------------------------------------------------
def _fused_stages_kernel(stage_meta, x_ref, *refs):
    n_stages = len(stage_meta)
    out_refs = refs[-n_stages:]
    param_refs = refs[:-n_stages]

    h = x_ref[...]                                      # f32 [tile, in_dim]
    p = 0
    for s, (n_layers, out_dim) in enumerate(stage_meta):
        for l in range(n_layers):
            w = param_refs[p][...]                      # bf16 [in_p, out_p]
            b = param_refs[p + 1][...]                  # f32  [1, out_p]
            p += 2
            # bf16 operands -> MXU, f32 accumulation, f32 bias add.
            h32 = jnp.dot(h.astype(jnp.bfloat16), w,
                          preferred_element_type=jnp.float32) + b
            if l != n_layers - 1:
                # LeakyReLU (slope in (0,1) => max(x, a*x)); carry bf16 to the
                # next layer to halve spill traffic of wide intermediates.
                h = jnp.maximum(h32, LEAKY_SLOPE * h32).astype(jnp.bfloat16)
            else:
                h = h32                                  # stage output (f32)
        # Slice to the stage's logical width; padded cols are exactly zero.
        out_refs[s][...] = h[:, :out_dim].astype(out_refs[s].dtype)


def fused_mlp_stages(x, stages, out_dims, out_dtypes, *, batch_tile=None):
    """Run a chain of MLP stages (each a list of padded (W_bf16, b_f32) layers)
    inside a single pallas_call.  Returns one [B, out_dims[s]] array per stage,
    with dtype out_dtypes[s]."""
    B, in_dim = x.shape
    assert in_dim == stages[0][0][0].shape[0], "x width must match first fan-in"

    if batch_tile is None:
        batch_tile = _choose_batch_tile(B)
    grid = (pl.cdiv(B, batch_tile),)   # ragged last block handled by Pallas

    in_specs = [pl.BlockSpec((batch_tile, in_dim), lambda i: (i, 0))]
    flat_params = []
    for stage in stages:
        for (w, b) in stage:
            # Constant-index whole-array blocks: DMA'd once, VMEM-resident.
            in_specs.append(pl.BlockSpec(w.shape, lambda i: (0, 0)))
            in_specs.append(pl.BlockSpec(b.shape, lambda i: (0, 0)))
            flat_params.extend([w, b])

    stage_meta = tuple((len(stage), d) for stage, d in zip(stages, out_dims))

    out_shapes = []
    out_specs = []
    for d, dt in zip(out_dims, out_dtypes):
        out_shapes.append(jax.ShapeDtypeStruct((B, d), dt))
        out_specs.append(pl.BlockSpec((batch_tile, d), lambda i: (i, 0)))

    kernel = functools.partial(_fused_stages_kernel, stage_meta)
    outs = pl.pallas_call(
        kernel,
        out_shape=tuple(out_shapes),
        grid_spec=pltpu.PrefetchScalarGridSpec(
            num_scalar_prefetch=0,
            grid=grid,
            in_specs=in_specs,
            out_specs=out_specs,
        ),
        compiler_params=pltpu.CompilerParams(
            # batch axis is independent -> megacore sharding on v7x
            dimension_semantics=("parallel",),
            # explicit scoped VMEM limit (above v5e's 16 MiB default); with
            # 1024-row tiles we use well under this.
            vmem_limit_bytes=32 * 1024 * 1024,
        ),
    )(x, *flat_params)

    return outs


# ----------------------------------------------------------------------------
# Parameter construction (deterministic, PyTorch nn.Linear default init) and
# zero-padding of feature dims to 128-lane multiples + bf16 weight cast.
# ----------------------------------------------------------------------------
def _init_linear(key, fan_in, fan_out):
    kw, kb = jax.random.split(key)
    bound = 1.0 / jnp.sqrt(float(fan_in))
    w = jax.random.uniform(kw, (fan_in, fan_out), jnp.float32, -bound, bound)
    b = jax.random.uniform(kb, (1, fan_out), jnp.float32, -bound, bound)
    return w, b


def _init_mlp(key, sizes):
    params = []
    keys = jax.random.split(key, len(sizes) - 1)
    for k, fi, fo in zip(keys, sizes[:-1], sizes[1:]):
        params.append(_init_linear(k, fi, fo))
    return params


def _pad_params(params, *, pad_first_fan_in=True):
    """Zero-pad fan_out (and fan_in for all but optionally the first layer) to
    128-lane multiples; weights -> bf16, bias f32.  Padding is exact: zero
    rows/cols contribute nothing to the matmul."""
    padded = []
    for l, (w, b) in enumerate(params):
        fi, fo = w.shape
        fi_p = _round_up(fi, LANE) if (l > 0 or pad_first_fan_in) else fi
        fo_p = _round_up(fo, LANE)
        w_p = jnp.pad(w, ((0, fi_p - fi), (0, fo_p - fo))).astype(jnp.bfloat16)
        b_p = jnp.pad(b, ((0, 0), (0, fo_p - fo))).astype(jnp.float32)
        padded.append((w_p, b_p))
    return padded


class LumitexelNetPallas:
    def __init__(self, key, lumitexel_length=512, latent_len=32,
                 encoder_hidden=(256, 128), decoder_hidden=(64, 128, 256)):
        k_enc, k_dec = jax.random.split(key)
        enc_sizes = (lumitexel_length,) + tuple(encoder_hidden) + (latent_len,)
        dec_sizes = (latent_len,) + tuple(decoder_hidden) + (lumitexel_length,)
        self.enc_params = _init_mlp(k_enc, enc_sizes)      # f32 reference copy
        self.dec_params = _init_mlp(k_dec, dec_sizes)
        # Encoder is fed directly by x (fan_in 512 is already lane-aligned).
        self.enc_padded = _pad_params(self.enc_params, pad_first_fan_in=False)
        # Decoder variant fed by the in-kernel (padded) latent after the encoder.
        self.dec_padded_from_enc = _pad_params(self.dec_params,
                                               pad_first_fan_in=True)
        # Decoder variant fed directly by the logical-width latent input
        # (avoids the 32->128 lane pad of x on the decoder-only path).
        self.dec_padded_from_x = _pad_params(self.dec_params,
                                             pad_first_fan_in=False)
        self.latent_len = latent_len
        self.lumitexel_length = lumitexel_length

    def __call__(self, x, input_is_latent=True):
        if input_is_latent:
            nn_latent = x                                  # passthrough
            (nn_lumi,) = fused_mlp_stages(
                x, [self.dec_padded_from_x],
                [self.lumitexel_length], [jnp.bfloat16])
        else:
            # Encoder + decoder fused in ONE kernel (no HBM latent round-trip).
            nn_latent, nn_lumi = fused_mlp_stages(
                x, [self.enc_padded, self.dec_padded_from_enc],
                [self.latent_len, self.lumitexel_length],
                [jnp.float32, jnp.bfloat16])
        return nn_latent, nn_lumi


class PlanarScannerNetPallas:
    def __init__(self, key, **kwargs):
        self.lumitexel_net = LumitexelNetPallas(key, **kwargs)

    def __call__(self, x, input_is_latent=True):
        nn_latent, nn_lumi = self.lumitexel_net(
            x, input_is_latent=input_is_latent)
        return nn_latent, nn_lumi


# ----------------------------------------------------------------------------
# Pure-JAX reference (same bf16-weight / f32-accumulate scheme as the kernel).
# ----------------------------------------------------------------------------
def _ref_mlp(x, params):
    h = x.astype(jnp.float32)
    for l, (w, b) in enumerate(params):
        h = jnp.dot(h.astype(jnp.bfloat16), w.astype(jnp.bfloat16),
                    preferred_element_type=jnp.float32) + b
        if l != len(params) - 1:
            h = jnp.maximum(h, LEAKY_SLOPE * h)
    return h


def _close(a, b, tol=2e-2):
    return jnp.allclose(a.astype(jnp.float32), b.astype(jnp.float32),
                        atol=tol, rtol=tol)


if __name__ == "__main__":
    key = jax.random.PRNGKey(0)
    k_param, k1, k2, k3 = jax.random.split(key, 4)

    latent_len = 32
    lumitexel_length = 512
    net = PlanarScannerNetPallas(
        k_param, lumitexel_length=lumitexel_length, latent_len=latent_len)
    enc_params = net.lumitexel_net.enc_params
    dec_params = net.lumitexel_net.dec_params

    # --- 1) small demo: latent input (decoder only), single grid step -------
    x_lat = jax.random.normal(k1, (16, latent_len), jnp.float32)
    nn_latent, nn_lumi = net(x_lat, input_is_latent=True)
    jax.block_until_ready((nn_latent, nn_lumi))
    assert nn_latent.shape == (16, latent_len)
    assert nn_lumi.shape == (16, lumitexel_length)
    assert jnp.allclose(nn_latent, x_lat)
    ref_lumi = _ref_mlp(x_lat, dec_params)
    assert _close(nn_lumi, ref_lumi)

    # --- 2) full lumitexel input: fused encoder + decoder in one kernel -----
    x_full = jax.random.normal(k2, (16, lumitexel_length), jnp.float32)
    lat2, lumi2 = net(x_full, input_is_latent=False)
    jax.block_until_ready((lat2, lumi2))
    ref_lat2 = _ref_mlp(x_full, enc_params)
    ref_lumi2 = _ref_mlp(ref_lat2, dec_params)
    assert lat2.shape == (16, latent_len) and lumi2.shape == (16, lumitexel_length)
    assert _close(lat2, ref_lat2)
    assert _close(lumi2, ref_lumi2)

    # --- 3) non-multiple batch: 2-way balanced grid + ragged last block -----
    x_big = jax.random.normal(k3, (300, latent_len), jnp.float32)
    _, lumi3 = net(x_big, input_is_latent=True)
    jax.block_until_ready(lumi3)
    ref_lumi3 = _ref_mlp(x_big, dec_params)
    assert lumi3.shape == (300, lumitexel_length)
    assert _close(lumi3, ref_lumi3)

    print("KERNEL_OK")
</pallas_src>

<mosaic_0001>
module attributes {stable_mosaic.version = 11 : i64} {
  func.func @_fused_stages_kernel(%arg0: i32, %arg1: memref<16x32xf32, #tpu.memory_space<vmem>>, %arg2: memref<32x128xbf16, #tpu.memory_space<vmem>>, %arg3: memref<1x128xf32, #tpu.memory_space<vmem>>, %arg4: memref<128x128xbf16, #tpu.memory_space<vmem>>, %arg5: memref<1x128xf32, #tpu.memory_space<vmem>>, %arg6: memref<128x256xbf16, #tpu.memory_space<vmem>>, %arg7: memref<1x256xf32, #tpu.memory_space<vmem>>, %arg8: memref<256x512xbf16, #tpu.memory_space<vmem>>, %arg9: memref<1x512xf32, #tpu.memory_space<vmem>>, %arg10: memref<16x512xbf16, #tpu.memory_space<vmem>>) attributes {dimension_semantics = [#tpu.dimension_semantics<parallel>], iteration_bounds = array<i64: 1>, scalar_prefetch = 0 : i64, scratch_operands = 0 : i64, tpu.core_type = #tpu.core_type<tc>, window_params = [{transform_indices = @transform_0, window_bounds = array<i64: 16, 32>}, {pipeline_mode = #tpu.pipeline_mode<synchronous>, transform_indices = @transform_1, window_bounds = array<i64: 32, 128>}, {pipeline_mode = #tpu.pipeline_mode<synchronous>, transform_indices = @transform_2, window_bounds = array<i64: 1, 128>}, {pipeline_mode = #tpu.pipeline_mode<synchronous>, transform_indices = @transform_3, window_bounds = array<i64: 128, 128>}, {pipeline_mode = #tpu.pipeline_mode<synchronous>, transform_indices = @transform_4, window_bounds = array<i64: 1, 128>}, {pipeline_mode = #tpu.pipeline_mode<synchronous>, transform_indices = @transform_5, window_bounds = array<i64: 128, 256>}, {pipeline_mode = #tpu.pipeline_mode<synchronous>, transform_indices = @transform_6, window_bounds = array<i64: 1, 256>}, {pipeline_mode = #tpu.pipeline_mode<synchronous>, transform_indices = @transform_7, window_bounds = array<i64: 256, 512>}, {pipeline_mode = #tpu.pipeline_mode<synchronous>, transform_indices = @transform_8, window_bounds = array<i64: 1, 512>}, {transform_indices = @transform_9, window_bounds = array<i64: 16, 512>}]} {
    %c0 = arith.constant 0 : index
    %c0_0 = arith.constant 0 : index
    %0 = vector.load %arg1[%c0, %c0_0] : memref<16x32xf32, #tpu.memory_space<vmem>>, vector<16x32xf32>
    %c0_1 = arith.constant 0 : index
    %c0_2 = arith.constant 0 : index
    %1 = vector.load %arg2[%c0_1, %c0_2] : memref<32x128xbf16, #tpu.memory_space<vmem>>, vector<32x128xbf16>
    %c0_3 = arith.constant 0 : index
    %c0_4 = arith.constant 0 : index
    %2 = vector.load %arg3[%c0_3, %c0_4] : memref<1x128xf32, #tpu.memory_space<vmem>>, vector<1x128xf32>
    %3 = arith.truncf %0 : vector<16x32xf32> to vector<16x32xbf16>
    %cst = arith.constant dense<0.000000e+00> : vector<16x128xf32>
    %4 = tpu.matmul %3, %1, %cst {dimension_numbers = #tpu.dot_dimension_numbers<[1], [0], [0], [1], [0, 0, 1, 1], [], []>} : vector<16x32xbf16>, vector<32x128xbf16>, vector<16x128xf32> -> vector<16x128xf32>
    %5 = vector.broadcast %2 : vector<1x128xf32> to vector<16x128xf32>
    %6 = arith.addf %4, %5 : vector<16x128xf32>
    %cst_5 = arith.constant 2.000000e-01 : f32
    %7 = vector.broadcast %cst_5 : f32 to vector<16x128xf32>
    %8 = arith.mulf %7, %6 : vector<16x128xf32>
    %9 = arith.maximumf %6, %8 : vector<16x128xf32>
    %10 = arith.truncf %9 : vector<16x128xf32> to vector<16x128xbf16>
    %c0_6 = arith.constant 0 : index
    %c0_7 = arith.constant 0 : index
    %11 = vector.load %arg4[%c0_6, %c0_7] : memref<128x128xbf16, #tpu.memory_space<vmem>>, vector<128x128xbf16>
    %c0_8 = arith.constant 0 : index
    %c0_9 = arith.constant 0 : index
    %12 = vector.load %arg5[%c0_8, %c0_9] : memref<1x128xf32, #tpu.memory_space<vmem>>, vector<1x128xf32>
    %cst_10 = arith.constant dense<0.000000e+00> : vector<16x128xf32>
    %13 = tpu.matmul %10, %11, %cst_10 {dimension_numbers = #tpu.dot_dimension_numbers<[1], [0], [0], [1], [0, 0, 1, 1], [], []>} : vector<16x128xbf16>, vector<128x128xbf16>, vector<16x128xf32> -> vector<16x128xf32>
    %14 = vector.broadcast %12 : vector<1x128xf32> to vector<16x128xf32>
    %15 = arith.addf %13, %14 : vector<16x128xf32>
    %cst_11 = arith.constant 2.000000e-01 : f32
    %16 = vector.broadcast %cst_11 : f32 to vector<16x128xf32>
    %17 = arith.mulf %16, %15 : vector<16x128xf32>
    %18 = arith.maximumf %15, %17 : vector<16x128xf32>
    %19 = arith.truncf %18 : vector<16x128xf32> to vector<16x128xbf16>
    %c0_12 = arith.constant 0 : index
    %c0_13 = arith.constant 0 : index
    %20 = vector.load %arg6[%c0_12, %c0_13] : memref<128x256xbf16, #tpu.memory_space<vmem>>, vector<128x256xbf16>
    %c0_14 = arith.constant 0 : index
    %c0_15 = arith.constant 0 : index
    %21 = vector.load %arg7[%c0_14, %c0_15] : memref<1x256xf32, #tpu.memory_space<vmem>>, vector<1x256xf32>
    %cst_16 = arith.constant dense<0.000000e+00> : vector<16x256xf32>
    %22 = tpu.matmul %19, %20, %cst_16 {dimension_numbers = #tpu.dot_dimension_numbers<[1], [0], [0], [1], [0, 0, 1, 1], [], []>} : vector<16x128xbf16>, vector<128x256xbf16>, vector<16x256xf32> -> vector<16x256xf32>
    %23 = vector.broadcast %21 : vector<1x256xf32> to vector<16x256xf32>
    %24 = arith.addf %22, %23 : vector<16x256xf32>
    %cst_17 = arith.constant 2.000000e-01 : f32
    %25 = vector.broadcast %cst_17 : f32 to vector<16x256xf32>
    %26 = arith.mulf %25, %24 : vector<16x256xf32>
    %27 = arith.maximumf %24, %26 : vector<16x256xf32>
    %28 = arith.truncf %27 : vector<16x256xf32> to vector<16x256xbf16>
    %c0_18 = arith.constant 0 : index
    %c0_19 = arith.constant 0 : index
    %29 = vector.load %arg8[%c0_18, %c0_19] : memref<256x512xbf16, #tpu.memory_space<vmem>>, vector<256x512xbf16>
    %c0_20 = arith.constant 0 : index
    %c0_21 = arith.constant 0 : index
    %30 = vector.load %arg9[%c0_20, %c0_21] : memref<1x512xf32, #tpu.memory_space<vmem>>, vector<1x512xf32>
    %cst_22 = arith.constant dense<0.000000e+00> : vector<16x512xf32>
    %31 = tpu.matmul %28, %29, %cst_22 {dimension_numbers = #tpu.dot_dimension_numbers<[1], [0], [0], [1], [0, 0, 1, 1], [], []>} : vector<16x256xbf16>, vector<256x512xbf16>, vector<16x512xf32> -> vector<16x512xf32>
    %32 = vector.broadcast %30 : vector<1x512xf32> to vector<16x512xf32>
    %33 = arith.addf %31, %32 : vector<16x512xf32>
    %34 = arith.truncf %33 : vector<16x512xf32> to vector<16x512xbf16>
    %c0_23 = arith.constant 0 : index
    %c0_24 = arith.constant 0 : index
    %35 = vector.load %arg10[%c0_23, %c0_24] : memref<16x512xbf16, #tpu.memory_space<vmem>>, vector<16x512xbf16>
    tpu.vector_store %arg10[%c0_23, %c0_24], %34 {strides = array<i32>} : memref<16x512xbf16, #tpu.memory_space<vmem>>, vector<16x512xbf16>,
    return
  }
  func.func @transform_0(%arg0: i32) -> (i32, i32) {
    %c0_i32 = arith.constant 0 : i32
    %c0_i32_0 = arith.constant 0 : i32
    return %arg0, %c0_i32 : i32, i32
  }
  func.func @transform_1(%arg0: i32) -> (i32, i32) {
    %c0_i32 = arith.constant 0 : i32
    %c0_i32_0 = arith.constant 0 : i32
    %c0_i32_1 = arith.constant 0 : i32
    return %c0_i32, %c0_i32_0 : i32, i32
  }
  func.func @transform_2(%arg0: i32) -> (i32, i32) {
    %c0_i32 = arith.constant 0 : i32
    %c0_i32_0 = arith.constant 0 : i32
    %c0_i32_1 = arith.constant 0 : i32
    return %c0_i32, %c0_i32_0 : i32, i32
  }
  func.func @transform_3(%arg0: i32) -> (i32, i32) {
    %c0_i32 = arith.constant 0 : i32
    %c0_i32_0 = arith.constant 0 : i32
    %c0_i32_1 = arith.constant 0 : i32
    return %c0_i32, %c0_i32_0 : i32, i32
  }
  func.func @transform_4(%arg0: i32) -> (i32, i32) {
    %c0_i32 = arith.constant 0 : i32
    %c0_i32_0 = arith.constant 0 : i32
    %c0_i32_1 = arith.constant 0 : i32
    return %c0_i32, %c0_i32_0 : i32, i32
  }
  func.func @transform_5(%arg0: i32) -> (i32, i32) {
    %c0_i32 = arith.constant 0 : i32
    %c0_i32_0 = arith.constant 0 : i32
    %c0_i32_1 = arith.constant 0 : i32
    return %c0_i32, %c0_i32_0 : i32, i32
  }
  func.func @transform_6(%arg0: i32) -> (i32, i32) {
    %c0_i32 = arith.constant 0 : i32
    %c0_i32_0 = arith.constant 0 : i32
    %c0_i32_1 = arith.constant 0 : i32
    return %c0_i32, %c0_i32_0 : i32, i32
  }
  func.func @transform_7(%arg0: i32) -> (i32, i32) {
    %c0_i32 = arith.constant 0 : i32
    %c0_i32_0 = arith.constant 0 : i32
    %c0_i32_1 = arith.constant 0 : i32
    return %c0_i32, %c0_i32_0 : i32, i32
  }
  func.func @transform_8(%arg0: i32) -> (i32, i32) {
    %c0_i32 = arith.constant 0 : i32
    %c0_i32_0 = arith.constant 0 : i32
    %c0_i32_1 = arith.constant 0 : i32
    return %c0_i32, %c0_i32_0 : i32, i32
  }
  func.func @transform_9(%arg0: i32) -> (i32, i32) {
    %c0_i32 = arith.constant 0 : i32
    %c0_i32_0 = arith.constant 0 : i32
    return %arg0, %c0_i32 : i32, i32
  }
}

</mosaic_0001>

<bundles_post_ra>
// kernel: tpu_custom_call.1
= control target key start
LH: loop header
LB: loop body
LE: loop exit
PB: predicated region body
PF: predicated region fallthrough
CT: control target
= control target key end

     0   :  { %14 = vsyncpa [#allocation3], 0  ;;  %s1678_s0 = inlined_call_operand.hbm [shape: f32[16,32], index: 0, kind: input, shape index: {}]   ;;  %s1679_s1 = inlined_call_operand.hbm [shape: bf16[32,128], index: 1, kind: input, shape index: {}]   ;;  %s1680_s2 = inlined_call_operand.vmem [shape: f32[1,128], index: 2, kind: input, shape index: {}]   ;;  %s1681_s3 = inlined_call_operand.hbm [shape: bf16[128,128], index: 3, kind: input, shape index: {}]   ;;  %s1682_s4 = inlined_call_operand.hbm [shape: f32[1,128], index: 4, kind: input, shape index: {}]   ;;  %s1683_s5 = inlined_call_operand.hbm [shape: bf16[128,256], index: 5, kind: input, shape index: {}]   ;;  %s1684_s6 = inlined_call_operand.vmem [shape: f32[1,256], index: 6, kind: input, shape index: {}]   ;;  %s1685_s7 = inlined_call_operand.hbm [shape: bf16[256,512], index: 7, kind: input, shape index: {}]   ;;  %s1686_s8 = inlined_call_operand.vmem [shape: f32[1,512], index: 8, kind: input, shape index: {}]   ;;  %s1687_s9 = inlined_call_operand.hbm [shape: bf16[16,512], index: 9, kind: output, shape index: {}]  }
   0x1   :  { %15 = vsyncpa [#allocation6], 0 }
   0x2   :  { %16 = vsyncpa [#allocation9], 0 }
   0x3   :  { %17 = vsyncpa [#allocation12], 0  ;;  %s36_s11 = sshll.u32 %s1679_s1, 4  ;;  %s37_s11 = int_to_ptr.hbm [resolvable:$true] %s36_s11 }
   0x4   :  { %18 = vsyncpa [#allocation4], 0  ;;  %s1579_s12 = smov [#allocation5]   ;;  %s65_s16 = sshll.u32 %s1682_s4, 4  ;;  %s66_s16 = int_to_ptr.hbm [resolvable:$true] %s65_s16 }
   0x5   :  { %s38_s13 = sshll.u32 %s1579_s12, 4  ;;  %s1580_s17 = smov 64   ;;  %s39_s13 = int_to_ptr.vmem [resolvable:$true] %s38_s13 }
   0x6   :  { %s1581_s18 = smov 4   ;;  %s1582_s19 = smov [#allocation8]  }
   0x7   :  { %44 = dma.hbm_to_vmem [thread:$0]  %s37_s11, 256, %s39_s13, [#allocation6], %s1580_s17, %s1580_s17, %s1581_s18  }
   0x8   :  { %s67_s20 = sshll.u32 %s1582_s19, 4  ;;  %s23_s23 = sshll.u32 %s1678_s0, 4  ;;  %s68_s20 = int_to_ptr.vmem [resolvable:$true] %s67_s20  ;;  %s24_s23 = int_to_ptr.hbm [resolvable:$true] %s23_s23 }
   0x9   :  { %70 = dma.hbm_to_vmem [thread:$0]  %s66_s16, 16, %s68_s20, [#allocation9]  }
   0xa   :  { %s1583_s1 = smov [#allocation2]   ;;  %s51_s4 = sshll.u32 %s1681_s3, 4  ;;  %s52_s4 = int_to_ptr.hbm [resolvable:$true] %s51_s4 }
   0xb   :  { %s25_s24 = sshll.u32 %s1583_s1, 4  ;;  %s1584_s27 = smov 128   ;;  %s26_s24 = int_to_ptr.vmem [resolvable:$true] %s25_s24 }
   0xc   :  { %s1585_s28 = smov 8   ;;  %s1586_s29 = smov [#allocation7]  }
   0xd   :  { %31 = dma.hbm_to_vmem [thread:$0]  %s24_s23, 256, %s26_s24, [#allocation3], %s1584_s27, %s1584_s27, %s1585_s28  }
   0xe   :  { %s53_s30 = sshll.u32 %s1586_s29, 4  ;;  %s75_s0 = sshll.u32 %s1683_s5, 4  ;;  %s54_s30 = int_to_ptr.vmem [resolvable:$true] %s53_s30  ;;  %s76_s0 = int_to_ptr.hbm [resolvable:$true] %s75_s0 }
   0xf   :  { %59 = dma.hbm_to_vmem [thread:$0]  %s52_s4, 1024, %s54_s30, [#allocation6], %s1580_s17, %s1580_s17, %s1581_s18  }
  0x10   :  { %s90_s14 = sshll.u32 %s1685_s7, 4  ;;  %s1587_s15 = smov [#allocation10]   ;;  %s91_s14 = int_to_ptr.hbm [resolvable:$true] %s90_s14 }
  0x11   :  { %s77_s16 = sshll.u32 %s1587_s15, 4  ;;  %s1588_s3 = smov [#allocation11]   ;;  %s78_s16 = int_to_ptr.vmem [resolvable:$true] %s77_s16 }
  0x12   :  { %83 = dma.hbm_to_vmem [thread:$0]  %s76_s0, 2048, %s78_s16, [#allocation9], %s1584_s27, %s1584_s27, %s1585_s28  }
  0x13   :  { %s92_s19 = sshll.u32 %s1588_s3, 4  ;;  %s1589_s20 = smov 256   ;;  %s93_s19 = int_to_ptr.vmem [resolvable:$true] %s92_s19 }
  0x14   :  { %s1590_s21 = smov 16  }
  0x15   :  { %98 = dma.hbm_to_vmem [thread:$0]  %s91_s14, 8192, %s93_s19, [#allocation12], %s1589_s20, %s1589_s20, %s1590_s21  }
  0x16   :  { %1569 = dma.done.wait [#allocation3], 256  }
  0x17   :  { %1570 = vsyncadd [#allocation3], 4294967040 }
  0x18   :  { %1571 = dma.done.wait [#allocation6], 1280  }
  0x19   :  { %1572 = vsyncadd [#allocation6], 4294966016 }
  0x1a   :  { %1573 = dma.done.wait [#allocation9], 2064  }
  0x1b   :  { %1574 = vsyncadd [#allocation9], 4294965232 }
  0x1c   :  { %1575 = dma.done.wait [#allocation12], 8192  }
  0x1d   :  { %1576 = vsyncadd [#allocation12], 4294959104  ;;  %v1297_v0 = vld [vmem:[#allocation5 + $0x8] sm:$0xff]  ;;  %v1296_v1 = vld [vmem:[#allocation5] sm:$0xff]  ;;  %vm149_vm0 = vcmask 261120   ;;  %s919_s24 = sshll.u32 %s1687_s9, 4  ;;  %s920_s24 = int_to_ptr.hbm [resolvable:$true] %s919_s24 }
  0x1e   :  { %v1305_v2 = vld [vmem:[#allocation7 + $0x38] sm:$0xff]  ;;  %159 = vmatpush.bf16.msra.mxu0 %v1297_v0  ;;  %v126_v3 = vld [vmem:[#allocation2] sm:$0xff]  ;;  %v127_v4 = vld [vmem:[#allocation2 + $0x8] sm:$0xff] }
  0x1f   :  { %240 = vmatpush.bf16.msra.mxu1 %v1305_v2  ;;  %v1304_v5 = vld [vmem:[#allocation7 + $0x30] sm:$0xff]  ;;  %v133_v6 = vpack.c.bf16 %v127_v4, %v126_v3  ;;  %v1303_v7 = vld [vmem:[#allocation7 + $0x28] sm:$0xff]  ;;  %v1302_v8 = vld [vmem:[#allocation7 + $0x20] sm:$0xff] }
  0x20   :  { %v1301_v9 = vld [vmem:[#allocation7 + $0x18] sm:$0xff]  ;;  %v1300_v10 = vld [vmem:[#allocation7 + $0x10] sm:$0xff]  ;;  %v1299_v11 = vld [vmem:[#allocation7 + $0x8] sm:$0xff] }
  0x21   :  { %v1298_v12 = vld [vmem:[#allocation7] sm:$0xff]  ;;  %v1034_v13 = vld [vmem:[#allocation10 + $0x70] sm:$0xf]  ;;  %v1321_v14 = vld [vmem:[#allocation10 + $0x74] sm:$0xf0] }
  0x22   :  { %160 = vmatpush.bf16.msra.mxu0 %v1296_v1  ;;  %v1320_v15 = vld [vmem:[#allocation10 + $0x74] sm:$0xf]  ;;  %v1035_v16 = vor.u32 %v1321_v14, %v1034_v13  ;;  %v1036_v17 = vld [vmem:[#allocation10 + $0x78] sm:$0xf0]  ;;  %v1026_v18 = vld [vmem:[#allocation10 + $0x60] sm:$0xf] }
  0x23   :  { %241 = vmatpush.bf16.msra.mxu1 %v1304_v5  ;;  %v1319_v19 = vld [vmem:[#allocation10 + $0x64] sm:$0xf0]  ;;  %v1039_v20 = vor.u32 %v1320_v15, %v1036_v17  ;;  %v1318_v21 = vld [vmem:[#allocation10 + $0x64] sm:$0xf]  ;;  %v1028_v22 = vld [vmem:[#allocation10 + $0x68] sm:$0xf0] }
  0x24   :  { %361 = vmatpush.bf16.msra.mxu2 %v1035_v16  ;;  %v1027_v23 = vor.u32 %v1319_v19, %v1026_v18  ;;  %v1031_v24 = vor.u32 %v1318_v21, %v1028_v22  ;;  %v1018_v25 = vld [vmem:[#allocation10 + $0x50] sm:$0xf]  ;;  %v1317_v26 = vld [vmem:[#allocation10 + $0x54] sm:$0xf0]  ;;  %v1316_v27 = vld [vmem:[#allocation10 + $0x54] sm:$0xf] }
  0x25   :  { %943 = vmatmul.msk.bf16.vlgmr.msra.gmra.mxu0 %vm149_vm0, %v133_v6  ;;  %375 = vmatpush.bf16.msra.mxu3 %v1039_v20  ;;  %v1020_v28 = vld [vmem:[#allocation10 + $0x58] sm:$0xf0]  ;;  %v1019_v29 = vor.u32 %v1317_v26, %v1018_v25  ;;  %v1010_v31 = vld [vmem:[#allocation10 + $0x40] sm:$0xf]  ;;  %v1315_v32 = vld [vmem:[#allocation10 + $0x44] sm:$0xf0] }
  0x26   :  { %v1023_v30 = vor.u32 %v1316_v27, %v1020_v28  ;;  %v1314_v33 = vld [vmem:[#allocation10 + $0x44] sm:$0xf]  ;;  %v1012_v34 = vld [vmem:[#allocation10 + $0x48] sm:$0xf0]  ;;  %v1011_v35 = vor.u32 %v1315_v32, %v1010_v31  ;;  %v1399_v38 = vld [vmem:[%s1680_s2] ss:$0 sm:$0xff] }
  0x27   :  { %242 = vmatpush.bf16.msra.mxu1 %v1303_v7  ;;  %v1015_v36 = vor.u32 %v1314_v33, %v1012_v34  ;;  %v1002_v47 = vld [vmem:[#allocation10 + $0x30] sm:$0xf]  ;;  %v1313_v48 = vld [vmem:[#allocation10 + $0x34] sm:$0xf0]  ;;  %v1312_v49 = vld [vmem:[#allocation10 + $0x34] sm:$0xf] }
  0x28   :  { %362 = vmatpush.bf16.msra.mxu2 %v1027_v23  ;;  %v1003_v50 = vor.u32 %v1313_v48, %v1002_v47  ;;  %v1004_v51 = vld [vmem:[#allocation10 + $0x38] sm:$0xf0]  ;;  %v994_v53 = vld [vmem:[#allocation10 + $0x20] sm:$0xf]  ;;  %v1311_v54 = vld [vmem:[#allocation10 + $0x24] sm:$0xf0] }
  0x29   :  { %376 = vmatpush.bf16.msra.mxu3 %v1031_v24  ;;  %v1007_v52 = vor.u32 %v1312_v49, %v1004_v51  ;;  %v1310_v55 = vld [vmem:[#allocation10 + $0x24] sm:$0xf]  ;;  %v995_v56 = vor.u32 %v1311_v54, %v994_v53  ;;  %v996_v57 = vld [vmem:[#allocation10 + $0x28] sm:$0xf0]  ;;  %v986_v59 = vld [vmem:[#allocation10 + $0x10] sm:$0xf] }
  0x2a   :  { %v999_v58 = vor.u32 %v1310_v55, %v996_v57  ;;  %v1309_v60 = vld [vmem:[#allocation10 + $0x14] sm:$0xf0]  ;;  %v1308_v61 = vld [vmem:[#allocation10 + $0x14] sm:$0xf]  ;;  %v988_v63 = vld [vmem:[#allocation10 + $0x18] sm:$0xf0] }
  0x2b   :  { %243 = vmatpush.bf16.msra.mxu1 %v1302_v8  ;;  %v987_v62 = vor.u32 %v1309_v60, %v986_v59  ;;  %v991_v0 = vor.u32 %v1308_v61, %v988_v63  ;;  %v978_v1 = vld [vmem:[#allocation10] sm:$0xf]  ;;  %v1307_v2 = vld [vmem:[#allocation10 + $0x4] sm:$0xf0]  ;;  %v1306_v3 = vld [vmem:[#allocation10 + $0x4] sm:$0xf] }
  0x2c   :  { %363 = vmatpush.bf16.msra.mxu2 %v1019_v29  ;;  %v979_v4 = vor.u32 %v1307_v2, %v978_v1  ;;  %v980_v5 = vld [vmem:[#allocation10 + $0x8] sm:$0xf0]  ;;  %v1154_v7 = vld [vmem:[#allocation11 + $0xe0] sm:$0xf]  ;;  %v1352_v8 = vld [vmem:[#allocation11 + $0xec] sm:$0xf0] }
  0x2d   :  { %377 = vmatpush.bf16.msra.mxu3 %v1023_v30  ;;  %v983_v6 = vor.u32 %v1306_v3, %v980_v5  ;;  %v1156_v13 = vld [vmem:[#allocation11 + $0xf0] sm:$0xf0]  ;;  %v1382_v16 = vld [vmem:[#allocation11 + $0x1e4] sm:$0xf]  ;;  %v1138_v18 = vld [vmem:[#allocation11 + $0xc0] sm:$0xf] }
  0x2e   :  { %v1284_v17 = vld [vmem:[#allocation11 + $0x1f0] sm:$0xf0]  ;;  %v1348_v20 = vld [vmem:[#allocation11 + $0xcc] sm:$0xf0]  ;;  %v1266_v21 = vld [vmem:[#allocation11 + $0x1c0] sm:$0xf] }
  0x2f   :  { %244 = vmatpush.bf16.msra.mxu1 %v1301_v9  ;;  %v1282_v9 = vld [vmem:[#allocation11 + $0x1e0] sm:$0xf]  ;;  %v1287_v19 = vor.u32 %v1382_v16, %v1284_v17  ;;  %v1380_v22 = vld [vmem:[#allocation11 + $0x1cc] sm:$0xf0]  ;;  %v1139_v23 = vor.u32 %v1348_v20, %v1138_v18  ;;  %v1346_v25 = vld [vmem:[#allocation11 + $0xc4] sm:$0xf] }
  0x30   :  { %364 = vmatpush.bf16.msra.mxu2 %v1011_v35  ;;  %v1267_v24 = vor.u32 %v1380_v22, %v1266_v21  ;;  %v1140_v26 = vld [vmem:[#allocation11 + $0xd0] sm:$0xf0]  ;;  %v1378_v27 = vld [vmem:[#allocation11 + $0x1c4] sm:$0xf]  ;;  %v1122_v30 = vld [vmem:[#allocation11 + $0xa0] sm:$0xf] }
  0x31   :  { %378 = vmatpush.bf16.msra.mxu3 %v1015_v36  ;;  %v1143_v28 = vor.u32 %v1346_v25, %v1140_v26  ;;  %v1268_v29 = vld [vmem:[#allocation11 + $0x1d0] sm:$0xf0]  ;;  %v1344_v31 = vld [vmem:[#allocation11 + $0xac] sm:$0xf0]  ;;  %v1250_v33 = vld [vmem:[#allocation11 + $0x1a0] sm:$0xf] }
  0x32   :  { %v1271_v32 = vor.u32 %v1378_v27, %v1268_v29  ;;  %v1376_v34 = vld [vmem:[#allocation11 + $0x1ac] sm:$0xf0]  ;;  %v1342_v35 = vld [vmem:[#allocation11 + $0xa4] sm:$0xf]  ;;  %v1123_v36 = vor.u32 %v1344_v31, %v1122_v30  ;;  %v1108_v48 = vld [vmem:[#allocation11 + $0x90] sm:$0xf0] }
  0x33   :  { %245 = vmatpush.bf16.msra.mxu1 %v1300_v10  ;;  %v1155_v10 = vor.u32 %v1352_v8, %v1154_v7  ;;  %v1338_v47 = vld [vmem:[#allocation11 + $0x84] sm:$0xf]  ;;  %v1090_v54 = vld [vmem:[#allocation11 + $0x60] sm:$0xf]  ;;  %v1336_v55 = vld [vmem:[#allocation11 + $0x6c] sm:$0xf0] }
  0x34   :  { %365 = vmatpush.bf16.msra.mxu2 %v1003_v50  ;;  %v1370_v49 = vld [vmem:[#allocation11 + $0x184] sm:$0xf]  ;;  %v1236_v50 = vld [vmem:[#allocation11 + $0x190] sm:$0xf0]  ;;  %v1111_v53 = vor.u32 %v1338_v47, %v1108_v48  ;;  %v1400_v63 = vld [vmem:[#allocation8] ss:$0 sm:$0xff]  ;;  %v1091_v1 = vor.u32 %v1336_v55, %v1090_v54 }
  0x35   :  { %379 = vmatpush.bf16.msra.mxu3 %v1007_v52  ;;  %793 = vmatpush.bf16.msrb.mxu0 %v1155_v10  ;;  %v1239_v57 = vor.u32 %v1370_v49, %v1236_v50  ;;  %v1334_v59 = vld [vmem:[#allocation11 + $0x64] sm:$0xf]  ;;  %v1092_v60 = vld [vmem:[#allocation11 + $0x70] sm:$0xf0]  ;;  %v1332_v5 = vld [vmem:[#allocation11 + $0x4c] sm:$0xf0] }
  0x36   :  { %v1366_v61 = vld [vmem:[#allocation11 + $0x164] sm:$0xf]  ;;  %v1095_v3 = vor.u32 %v1334_v59, %v1092_v60  ;;  %v1364_v8 = vld [vmem:[#allocation11 + $0x14c] sm:$0xf0]  ;;  %v1076_v10 = vld [vmem:[#allocation11 + $0x50] sm:$0xf0] }
  0x37   :  { %246 = vmatpush.bf16.msra.mxu1 %v1299_v11  ;;  %v1384_v11 = vld [vmem:[#allocation11 + $0x1ec] sm:$0xf0]  ;;  %v1058_v17 = vld [vmem:[#allocation11 + $0x20] sm:$0xf]  ;;  %v1326_v22 = vld [vmem:[#allocation11 + $0x24] sm:$0xf] }
  0x38   :  { %366 = vmatpush.bf16.msra.mxu2 %v995_v56  ;;  %v1283_v14 = vor.u32 %v1384_v11, %v1282_v9  ;;  %v1218_v56 = vld [vmem:[#allocation11 + $0x160] sm:$0xf]  ;;  %v1330_v9 = vld [vmem:[#allocation11 + $0x44] sm:$0xf]  ;;  %v1328_v18 = vld [vmem:[#allocation11 + $0x2c] sm:$0xf0] }
  0x39   :  { %380 = vmatpush.bf16.msra.mxu3 %v999_v58  ;;  %794 = vmatpush.bf16.msrb.mxu0 %v1139_v23  ;;  %v1368_v58 = vld [vmem:[#allocation11 + $0x16c] sm:$0xf0]  ;;  %v1362_v11 = vld [vmem:[#allocation11 + $0x144] sm:$0xf]  ;;  %v1079_v16 = vor.u32 %v1330_v9, %v1076_v10  ;;  %v1060_v23 = vld [vmem:[#allocation11 + $0x30] sm:$0xf0]  ;;  %v1059_v27 = vor.u32 %v1328_v18, %v1058_v17 }
  0x3a   :  { %v1219_v2 = vor.u32 %v1368_v58, %v1218_v56  ;;  %v1360_v21 = vld [vmem:[#allocation11 + $0x12c] sm:$0xf0]  ;;  %v1188_v25 = vld [vmem:[#allocation11 + $0x130] sm:$0xf0]  ;;  %v1063_v31 = vor.u32 %v1326_v22, %v1060_v23  ;;  %v1162_v49 = vld [vmem:[#allocation11 + $0xe8] sm:$0xf] }
  0x3b   :  { %247 = vmatpush.bf16.msra.mxu1 %v1298_v12  ;;  %v1350_v12 = vld [vmem:[#allocation11 + $0xe4] sm:$0xf]  ;;  %v1353_v50 = vld [vmem:[#allocation11 + $0xf4] sm:$0xf0]  ;;  %v1351_v54 = vld [vmem:[#allocation11 + $0xec] sm:$0xf] }
  0x3c   :  { %367 = vmatpush.bf16.msra.mxu2 %v987_v62  ;;  %v1159_v15 = vor.u32 %v1350_v12, %v1156_v13  ;;  %v1220_v62 = vld [vmem:[#allocation11 + $0x170] sm:$0xf0]  ;;  %v1164_v55 = vld [vmem:[#allocation11 + $0xf8] sm:$0xf0]  ;;  %v1383_v58 = vld [vmem:[#allocation11 + $0x1ec] sm:$0xf] }
  0x3d   :  { %381 = vmatpush.bf16.msra.mxu3 %v991_v0  ;;  %795 = vmatpush.bf16.msrb.mxu0 %v1123_v36  ;;  %v1223_v7 = vor.u32 %v1366_v61, %v1220_v62  ;;  %v1204_v12 = vld [vmem:[#allocation11 + $0x150] sm:$0xf0]  ;;  %v1292_v59 = vld [vmem:[#allocation11 + $0x1f8] sm:$0xf0]  ;;  %v1146_v60 = vld [vmem:[#allocation11 + $0xc8] sm:$0xf] }
  0x3e   :  { %v1207_v20 = vor.u32 %v1362_v11, %v1204_v12  ;;  %v1295_v61 = vor.u32 %v1383_v58, %v1292_v59  ;;  %v1349_v62 = vld [vmem:[#allocation11 + $0xd4] sm:$0xf0]  ;;  %v1130_v9 = vld [vmem:[#allocation11 + $0xa8] sm:$0xf]  ;;  %v1375_v18 = vld [vmem:[#allocation11 + $0x1ac] sm:$0xf] }
  0x3f   :  { %807 = vmatpush.bf16.msrb.mxu1 %v1283_v14  ;;  %v1345_v10 = vld [vmem:[#allocation11 + $0xb4] sm:$0xf0]  ;;  %v1258_v11 = vld [vmem:[#allocation11 + $0x1a8] sm:$0xf] }
  0x40   :  { %368 = vmatpush.bf16.msra.mxu2 %v979_v4  ;;  %v1074_v4 = vld [vmem:[#allocation11 + $0x40] sm:$0xf]  ;;  %v1131_v12 = vor.u32 %v1345_v10, %v1130_v9  ;;  %v1341_v22 = vld [vmem:[#allocation11 + $0x94] sm:$0xf0]  ;;  %v1242_v23 = vld [vmem:[#allocation11 + $0x188] sm:$0xf] }
  0x41   :  { %382 = vmatpush.bf16.msra.mxu3 %v983_v6  ;;  %v1202_v6 = vld [vmem:[#allocation11 + $0x140] sm:$0xf]  ;;  %v1075_v13 = vor.u32 %v1332_v5, %v1074_v4  ;;  %v1148_v4 = vld [vmem:[#allocation11 + $0xd8] sm:$0xf0]  ;;  %v1379_v5 = vld [vmem:[#allocation11 + $0x1cc] sm:$0xf] }
  0x42   :  { %v1194_v59 = vld [vmem:[#allocation11 + $0x128] sm:$0xf]  ;;  %v1323_v9 = vld [vmem:[#allocation11 + $0xc] sm:$0xf]  ;;  %v1052_v10 = vld [vmem:[#allocation11 + $0x18] sm:$0xf0] }
  0x43   :  { %808 = vmatpush.bf16.msrb.mxu1 %v1267_v24  ;;  %v1358_v24 = vld [vmem:[#allocation11 + $0x124] sm:$0xf] }
  0x44   :  { %821 = vmatpush.bf16.msrb.mxu2 %v1159_v15  ;;  %v1203_v15 = vor.u32 %v1364_v8, %v1202_v6 }
  0x45   :  { %835 = vmatpush.bf16.msrb.mxu3 %v1287_v19  ;;  %v1186_v19 = vld [vmem:[#allocation11 + $0x120] sm:$0xf] }
  0x46   :  { %v1187_v30 = vor.u32 %v1360_v21, %v1186_v19  ;;  %v1260_v19 = vld [vmem:[#allocation11 + $0x1b8] sm:$0xf0]  ;;  %v1114_v21 = vld [vmem:[#allocation11 + $0x88] sm:$0xf] }
  0x48   :  { %822 = vmatpush.bf16.msrb.mxu2 %v1143_v28 }
  0x49   :  { %836 = vmatpush.bf16.msrb.mxu3 %v1271_v32  ;;  %v1191_v32 = vor.u32 %v1358_v24, %v1188_v25  ;;  %v1115_v24 = vor.u32 %v1341_v22, %v1114_v21  ;;  %v1373_v25 = vld [vmem:[#allocation11 + $0x194] sm:$0xf0] }
  0xa2   :  { %v162_v37 = vpop.f32.mrf.mxu0 }
  0xa3   :  { %v163_v39 = vadd.f32 %v1399_v38, %v162_v37  ;;  %v1124_v37 = vld [vmem:[#allocation11 + $0xb0] sm:$0xf0] }
  0xa5   :  { %v167_v41 = vmul.f32 0.2, %v163_v39 }
  0xa7   :  { %v169_v44 = vmax.f32 %v163_v39, %v167_v41  ;;  %v1252_v39 = vld [vmem:[#allocation11 + $0x1b0] sm:$0xf0]  ;;  %v1127_v41 = vor.u32 %v1342_v35, %v1124_v37  ;;  %v1042_v37 = vld [vmem:[#allocation11] sm:$0xf] }
  0xa9   :  { %823 = vmatpush.bf16.msrb.mxu2 %v1127_v41  ;;  %v1356_v41 = vld [vmem:[#allocation11 + $0x10c] sm:$0xf0] }
  0xaa   :  { %v164_v40 = vpop.f32.mrf.mxu0 }
  0xab   :  { %v165_v42 = vadd.f32 %v1399_v38, %v164_v40  ;;  %v1374_v38 = vld [vmem:[#allocation11 + $0x1a4] sm:$0xf]  ;;  %v1251_v40 = vor.u32 %v1376_v34, %v1250_v33 }
  0xad   :  { %v168_v43 = vmul.f32 0.2, %v165_v42  ;;  %809 = vmatpush.bf16.msrb.mxu1 %v1251_v40  ;;  %824 = vmatpush.bf16.msrb.mxu2 %v1111_v53  ;;  %v1385_v53 = vld [vmem:[#allocation11 + $0x1f4] sm:$0xf0] }
  0xaf   :  { %v170_v45 = vmax.f32 %v165_v42, %v168_v43  ;;  %v1106_v42 = vld [vmem:[#allocation11 + $0x80] sm:$0xf]  ;;  %v1340_v43 = vld [vmem:[#allocation11 + $0x8c] sm:$0xf0] }
  0xb0   :  { %v1107_v51 = vor.u32 %v1340_v43, %v1106_v42  ;;  %v1322_v42 = vld [vmem:[#allocation11 + $0x4] sm:$0xf] }
  0xb1   :  { %v171_v46 = vpack.c.bf16 %v170_v45, %v169_v44  ;;  %v1234_v44 = vld [vmem:[#allocation11 + $0x180] sm:$0xf]  ;;  %v1255_v45 = vor.u32 %v1374_v38, %v1252_v39  ;;  %825 = vmatpush.bf16.msrb.mxu2 %v1095_v3  ;;  %v1324_v38 = vld [vmem:[#allocation11 + $0xc] sm:$0xf0]  ;;  %v1347_v3 = vld [vmem:[#allocation11 + $0xcc] sm:$0xf] }
  0xb2   :  { %796 = vmatpush.bf16.msrb.mxu0 %v1107_v51  ;;  %v1170_v39 = vld [vmem:[#allocation11 + $0x100] sm:$0xf]  ;;  %v1043_v40 = vor.u32 %v1324_v38, %v1042_v37  ;;  %v1290_v51 = vld [vmem:[#allocation11 + $0x1e8] sm:$0xf]  ;;  %v1151_v6 = vor.u32 %v1347_v3, %v1148_v4  ;;  %v1369_v37 = vld [vmem:[#allocation11 + $0x174] sm:$0xf0] }
  0xb3   :  { %248 = vmatmul.bf16.vlgmr.msra.gmra.mxu1 %v171_v46  ;;  %v1372_v46 = vld [vmem:[#allocation11 + $0x18c] sm:$0xf0]  ;;  %837 = vmatpush.bf16.msrb.mxu3 %v1255_v45  ;;  %v1171_v43 = vor.u32 %v1356_v41, %v1170_v39  ;;  %v1354_v45 = vld [vmem:[#allocation11 + $0x104] sm:$0xf]  ;;  %v1291_v56 = vor.u32 %v1385_v53, %v1290_v51  ;;  %v1335_v38 = vld [vmem:[#allocation11 + $0x6c] sm:$0xf] }
  0xb4   :  { %v1235_v52 = vor.u32 %v1372_v46, %v1234_v44  ;;  %v1044_v44 = vld [vmem:[#allocation11 + $0x10] sm:$0xf0]  ;;  %v1100_v39 = vld [vmem:[#allocation11 + $0x78] sm:$0xf0]  ;;  %v1050_v4 = vld [vmem:[#allocation11 + $0x8] sm:$0xf] }
  0xb5   :  { %826 = vmatpush.bf16.msrb.mxu2 %v1079_v16  ;;  %v1172_v46 = vld [vmem:[#allocation11 + $0x110] sm:$0xf0]  ;;  %v1047_v47 = vor.u32 %v1322_v42, %v1044_v44  ;;  %v1103_v41 = vor.u32 %v1335_v38, %v1100_v39  ;;  %v1367_v42 = vld [vmem:[#allocation11 + $0x16c] sm:$0xf]  ;;  %v1082_v44 = vld [vmem:[#allocation11 + $0x48] sm:$0xf] }
  0xb6   :  { %810 = vmatpush.bf16.msrb.mxu1 %v1235_v52  ;;  %797 = vmatpush.bf16.msrb.mxu0 %v1091_v1  ;;  %v1175_v48 = vor.u32 %v1354_v45, %v1172_v46  ;;  %v1163_v52 = vor.u32 %v1353_v50, %v1162_v49  ;;  %v1147_v1 = vor.u32 %v1349_v62, %v1146_v60  ;;  %v1333_v46 = vld [vmem:[#allocation11 + $0x54] sm:$0xf0]  ;;  %v1331_v50 = vld [vmem:[#allocation11 + $0x4c] sm:$0xf]  ;;  %v1084_v51 = vld [vmem:[#allocation11 + $0x58] sm:$0xf0] }
  0xb7   :  { %838 = vmatpush.bf16.msrb.mxu3 %v1239_v57  ;;  %v1167_v57 = vor.u32 %v1351_v54, %v1164_v55  ;;  %v1083_v49 = vor.u32 %v1333_v46, %v1082_v44  ;;  %v1087_v54 = vor.u32 %v1331_v50, %v1084_v51  ;;  %v1212_v55 = vld [vmem:[#allocation11 + $0x158] sm:$0xf0]  ;;  %v1361_v60 = vld [vmem:[#allocation11 + $0x134] sm:$0xf0] }
  0xb8   :  { %v1068_v62 = vld [vmem:[#allocation11 + $0x38] sm:$0xf0] }
  0xb9   :  { %827 = vmatpush.bf16.msrb.mxu2 %v1063_v31  ;;  %v1244_v31 = vld [vmem:[#allocation11 + $0x198] sm:$0xf0] }
  0xba   :  { %811 = vmatpush.bf16.msrb.mxu1 %v1219_v2  ;;  %798 = vmatpush.bf16.msrb.mxu0 %v1075_v13  ;;  %v1377_v13 = vld [vmem:[#allocation11 + $0x1b4] sm:$0xf0]  ;;  %v463_v38 = vld [vmem:[%s1686_s8] sm:$0xf]  ;;  %s1591_s8 = smov [#allocation13]  }
  0xbb   :  { %839 = vmatpush.bf16.msrb.mxu3 %v1223_v7  ;;  %v1276_v7 = vld [vmem:[#allocation11 + $0x1d8] sm:$0xf0]  ;;  %v1259_v16 = vor.u32 %v1377_v13, %v1258_v11  ;;  %v1355_v11 = vld [vmem:[#allocation11 + $0x10c] sm:$0xf]  ;;  %s917_s22 = sshll.u32 %s1591_s8, 4  ;;  %s918_s22 = int_to_ptr.vmem [resolvable:$true] %s917_s22 }
  0xbc   :  { %v1279_v8 = vor.u32 %v1379_v5, %v1276_v7  ;;  %v1325_v5 = vld [vmem:[#allocation11 + $0x14] sm:$0xf0] }
  0xbd   :  { %828 = vmatpush.bf16.msrb.mxu2 %v1047_v47  ;;  %v1210_v47 = vld [vmem:[#allocation11 + $0x148] sm:$0xf]  ;;  %v1051_v13 = vor.u32 %v1325_v5, %v1050_v4 }
  0xbe   :  { %812 = vmatpush.bf16.msrb.mxu1 %v1203_v15  ;;  %799 = vmatpush.bf16.msrb.mxu0 %v1059_v27  ;;  %v1132_v15 = vld [vmem:[#allocation11 + $0xb8] sm:$0xf0] }
  0xbf   :  { %840 = vmatpush.bf16.msrb.mxu3 %v1207_v20  ;;  %v1263_v20 = vor.u32 %v1375_v18, %v1260_v19  ;;  %v1116_v27 = vld [vmem:[#allocation11 + $0x98] sm:$0xf0] }
  0xc2   :  { %813 = vmatpush.bf16.msrb.mxu1 %v1187_v30  ;;  %800 = vmatpush.bf16.msrb.mxu0 %v1043_v40  ;;  %v1371_v30 = vld [vmem:[#allocation11 + $0x18c] sm:$0xf] }
  0xc3   :  { %841 = vmatpush.bf16.msrb.mxu3 %v1191_v32  ;;  %v1247_v32 = vor.u32 %v1371_v30, %v1244_v31 }
  0xc6   :  { %814 = vmatpush.bf16.msrb.mxu1 %v1171_v43  ;;  %849 = vmatpush.bf16.msra.mxu0 %v1163_v52  ;;  %v1228_v43 = vld [vmem:[#allocation11 + $0x178] sm:$0xf0]  ;;  %v1363_v52 = vld [vmem:[#allocation11 + $0x14c] sm:$0xf] }
  0xc7   :  { %842 = vmatpush.bf16.msrb.mxu3 %v1175_v48  ;;  %v1231_v45 = vor.u32 %v1367_v42, %v1228_v43  ;;  %v1365_v48 = vld [vmem:[#allocation11 + $0x154] sm:$0xf0]  ;;  %v1215_v58 = vor.u32 %v1363_v52, %v1212_v55  ;;  %v466_v42 = vperm.slane %v463_v38, 1 }
  0xc8   :  { %v1211_v53 = vor.u32 %v1365_v48, %v1210_v47 }
  0xca   :  { %863 = vmatpush.bf16.msra.mxu1 %v1291_v56  ;;  %850 = vmatpush.bf16.msra.mxu0 %v1147_v1  ;;  %v1066_v56 = vld [vmem:[#allocation11 + $0x28] sm:$0xf] }
  0xce   :  { %851 = vmatpush.bf16.msra.mxu0 %v1131_v12  ;;  %v1180_v12 = vld [vmem:[#allocation11 + $0x118] sm:$0xf0] }
  0xd2   :  { %852 = vmatpush.bf16.msra.mxu0 %v1115_v24 }
 0x130   :  { %v249_v0 = vpop.f32.mrf.mxu1 }
 0x131   :  { %v250_v14 = vadd.f32 %v1400_v63, %v249_v0  ;;  %v1381_v0 = vld [vmem:[#allocation11 + $0x1d4] sm:$0xf0] }
 0x133   :  { %v254_v28 = vmul.f32 0.2, %v250_v14 }
 0x135   :  { %v256_v34 = vmax.f32 %v250_v14, %v254_v28  ;;  %v1343_v14 = vld [vmem:[#allocation11 + $0xac] sm:$0xf]  ;;  %v1243_v28 = vor.u32 %v1373_v25, %v1242_v23 }
 0x136   :  { %v1135_v17 = vor.u32 %v1343_v14, %v1132_v15  ;;  %v1055_v15 = vor.u32 %v1323_v9, %v1052_v10 }
 0x138   :  { %v251_v26 = vpop.f32.mrf.mxu1 }
 0x139   :  { %v252_v29 = vadd.f32 %v1400_v63, %v251_v26  ;;  %v1274_v63 = vld [vmem:[#allocation11 + $0x1c8] sm:$0xf]  ;;  %v1339_v26 = vld [vmem:[#allocation11 + $0x8c] sm:$0xf] }
 0x13a   :  { %v1275_v2 = vor.u32 %v1381_v0, %v1274_v63  ;;  %v1359_v63 = vld [vmem:[#allocation11 + $0x12c] sm:$0xf]  ;;  %v1196_v0 = vld [vmem:[#allocation11 + $0x138] sm:$0xf0] }
 0x13b   :  { %v255_v33 = vmul.f32 0.2, %v252_v29  ;;  %v1199_v7 = vor.u32 %v1359_v63, %v1196_v0 }
 0x13c   :  { %864 = vmatpush.bf16.msra.mxu1 %v1275_v2  ;;  %v1195_v2 = vor.u32 %v1361_v60, %v1194_v59  ;;  %v467_v59 = vperm.slane %v463_v38, 2 }
 0x13d   :  { %v257_v35 = vmax.f32 %v252_v29, %v255_v33  ;;  %v1119_v29 = vor.u32 %v1339_v26, %v1116_v27  ;;  %v1098_v33 = vld [vmem:[#allocation11 + $0x68] sm:$0xf] }
 0x13f   :  { %v258_v36 = vpack.c.bf16 %v257_v35, %v256_v34  ;;  %v1337_v34 = vld [vmem:[#allocation11 + $0x74] sm:$0xf0]  ;;  %v1226_v35 = vld [vmem:[#allocation11 + $0x168] sm:$0xf] }
 0x140   :  { %865 = vmatpush.bf16.msra.mxu1 %v1259_v16  ;;  %v1227_v40 = vor.u32 %v1369_v37, %v1226_v35  ;;  %v275_v16 = vld [vmem:[%s1684_s6] sm:$0x3] }
 0x141   :  { %369 = vmatmul.bf16.vlgmr.msra.gmra.mxu2 %v258_v36  ;;  %383 = vmatmul.bf16.vlgmr.msra.gmra.mxu3 %v258_v36  ;;  %v1099_v36 = vor.u32 %v1337_v34, %v1098_v33  ;;  %v278_v21 = vperm.slane %v275_v16, 1 }
 0x142   :  { %877 = vmatpush.bf16.msra.mxu2 %v1167_v57  ;;  %891 = vmatpush.bf16.msra.mxu3 %v1295_v61  ;;  %v1329_v57 = vld [vmem:[#allocation11 + $0x34] sm:$0xf0]  ;;  %v1327_v61 = vld [vmem:[#allocation11 + $0x2c] sm:$0xf] }
 0x143   :  { %853 = vmatpush.bf16.msra.mxu0 %v1099_v36  ;;  %v1067_v1 = vor.u32 %v1329_v57, %v1066_v56  ;;  %v1071_v3 = vor.u32 %v1327_v61, %v1068_v62  ;;  %v468_v61 = vperm.slane %v463_v38, 3 }
 0x144   :  { %866 = vmatpush.bf16.msra.mxu1 %v1243_v28 }
 0x146   :  { %878 = vmatpush.bf16.msra.mxu2 %v1151_v6  ;;  %892 = vmatpush.bf16.msra.mxu3 %v1279_v8  ;;  %v1178_v6 = vld [vmem:[#allocation11 + $0x108] sm:$0xf]  ;;  %v1357_v8 = vld [vmem:[#allocation11 + $0x114] sm:$0xf0] }
 0x147   :  { %854 = vmatpush.bf16.msra.mxu0 %v1083_v49  ;;  %v1179_v14 = vor.u32 %v1357_v8, %v1178_v6 }
 0x148   :  { %867 = vmatpush.bf16.msra.mxu1 %v1227_v40  ;;  %v465_v40 = vperm.slane %v463_v38, 0 }
 0x14a   :  { %879 = vmatpush.bf16.msra.mxu2 %v1135_v17  ;;  %893 = vmatpush.bf16.msra.mxu3 %v1263_v20  ;;  %v1183_v17 = vor.u32 %v1355_v11, %v1180_v12  ;;  %v277_v20 = vperm.slane %v275_v16, 0 }
 0x14b   :  { %855 = vmatpush.bf16.msra.mxu0 %v1067_v1 }
 0x14c   :  { %868 = vmatpush.bf16.msra.mxu1 %v1211_v53 }
 0x14e   :  { %880 = vmatpush.bf16.msra.mxu2 %v1119_v29  ;;  %894 = vmatpush.bf16.msra.mxu3 %v1247_v32 }
 0x14f   :  { %856 = vmatpush.bf16.msra.mxu0 %v1051_v13 }
 0x150   :  { %869 = vmatpush.bf16.msra.mxu1 %v1195_v2 }
 0x152   :  { %881 = vmatpush.bf16.msra.mxu2 %v1103_v41  ;;  %895 = vmatpush.bf16.msra.mxu3 %v1231_v45 }
 0x154   :  { %870 = vmatpush.bf16.msra.mxu1 %v1179_v14 }
 0x156   :  { %882 = vmatpush.bf16.msra.mxu2 %v1087_v54  ;;  %896 = vmatpush.bf16.msra.mxu3 %v1215_v58 }
 0x15a   :  { %883 = vmatpush.bf16.msra.mxu2 %v1071_v3  ;;  %897 = vmatpush.bf16.msra.mxu3 %v1199_v7 }
 0x15e   :  { %884 = vmatpush.bf16.msra.mxu2 %v1055_v15  ;;  %898 = vmatpush.bf16.msra.mxu3 %v1183_v17 }
 0x1c4   :  { %v370_v18 = vpop.f32.mrf.mxu2  ;;  %v384_v19 = vpop.f32.mrf.mxu3 }
 0x1c5   :  { %v371_v22 = vadd.f32 %v370_v18, %v277_v20  ;;  %v385_v23 = vadd.f32 %v384_v19, %v278_v21 }
 0x1c7   :  { %v389_v26 = vmul.f32 0.2, %v371_v22  ;;  %v390_v27 = vmul.f32 0.2, %v385_v23 }
 0x1c9   :  { %v393_v32 = vmax.f32 %v371_v22, %v389_v26  ;;  %v394_v33 = vmax.f32 %v385_v23, %v390_v27 }
 0x1cc   :  { %v372_v24 = vpop.f32.mrf.mxu2  ;;  %v386_v25 = vpop.f32.mrf.mxu3 }
 0x1cd   :  { %v373_v28 = vadd.f32 %v372_v24, %v277_v20  ;;  %v387_v29 = vadd.f32 %v386_v25, %v278_v21 }
 0x1cf   :  { %v391_v30 = vmul.f32 0.2, %v373_v28  ;;  %v392_v31 = vmul.f32 0.2, %v387_v29 }
 0x1d1   :  { %v395_v34 = vmax.f32 %v373_v28, %v391_v30  ;;  %v396_v35 = vmax.f32 %v387_v29, %v392_v31 }
 0x1d3   :  { %v397_v36 = vpack.c.bf16 %v395_v34, %v393_v32  ;;  %v398_v37 = vpack.c.bf16 %v396_v35, %v394_v33 }
 0x1d5   :  { %801 = vmatmul.bf16.vlgmr.msrb.gmra.mxu0 %v397_v36  ;;  %815 = vmatmul.bf16.vlgmr.msrb.gmra.mxu1 %v398_v37 }
 0x1d6   :  { %829 = vmatmul.bf16.vlgmr.msrb.gmra.mxu2 %v397_v36  ;;  %843 = vmatmul.bf16.vlgmr.msrb.gmra.mxu3 %v398_v37 }
 0x1e5   :  { %857 = vmatmul.bf16.vlgmr.msra.gmra.mxu0 %v397_v36  ;;  %871 = vmatmul.bf16.vlgmr.msra.gmra.mxu1 %v398_v37 }
 0x1e6   :  { %885 = vmatmul.bf16.vlgmr.msra.gmra.mxu2 %v397_v36  ;;  %899 = vmatmul.bf16.vlgmr.msra.gmra.mxu3 %v398_v37 }
 0x252   :  { %v802_v39 = vpop.f32.mrf.mxu0  ;;  %v816_v41 = vpop.f32.mrf.mxu1 }
 0x253   :  { %v803_v43 = vadd.f32 %v802_v39, %v465_v40 }
 0x255   :  { %v817_v48 = vadd.f32 %v816_v41, %v803_v43 }
 0x259   :  { %v830_v44 = vpop.f32.mrf.mxu2  ;;  %v844_v45 = vpop.f32.mrf.mxu3 }
 0x25a   :  { %v831_v46 = vadd.f32 %v830_v44, %v466_v42  ;;  %v804_v47 = vpop.f32.mrf.mxu0  ;;  %v818_v51 = vpop.f32.mrf.mxu1 }
 0x25b   :  { %v805_v52 = vadd.f32 %v804_v47, %v465_v40 }
 0x25c   :  { %v845_v49 = vadd.f32 %v844_v45, %v831_v46 }
 0x25d   :  { %v819_v57 = vadd.f32 %v818_v51, %v805_v52 }
 0x25e   :  { %v905_v50 = vpack.c.bf16 %v845_v49, %v817_v48 }
 0x260   :  { %909 = vst [vmem:[#allocation13] sm:$0xff] %v905_v50 }
 0x261   :  { %v832_v53 = vpop.f32.mrf.mxu2  ;;  %v846_v54 = vpop.f32.mrf.mxu3 }
 0x262   :  { %v833_v55 = vadd.f32 %v832_v53, %v466_v42  ;;  %v858_v56 = vpop.f32.mrf.mxu0  ;;  %v872_v63 = vpop.f32.mrf.mxu1 }
 0x263   :  { %v859_v62 = vadd.f32 %v858_v56, %v467_v59 }
 0x264   :  { %v847_v58 = vadd.f32 %v846_v54, %v833_v55 }
 0x265   :  { %v873_v3 = vadd.f32 %v872_v63, %v859_v62 }
 0x266   :  { %v907_v60 = vpack.c.bf16 %v847_v58, %v819_v57 }
 0x268   :  { %911 = vst [vmem:[#allocation13 + $0x10] sm:$0xff] %v907_v60 }
 0x269   :  { %v886_v0 = vpop.f32.mrf.mxu2  ;;  %v900_v1 = vpop.f32.mrf.mxu3 }
 0x26a   :  { %v887_v2 = vadd.f32 %v886_v0, %v468_v61  ;;  %v860_v5 = vpop.f32.mrf.mxu0  ;;  %v874_v10 = vpop.f32.mrf.mxu1 }
 0x26b   :  { %v861_v7 = vadd.f32 %v860_v5, %v467_v59 }
 0x26c   :  { %v901_v4 = vadd.f32 %v900_v1, %v887_v2 }
 0x26d   :  { %v875_v12 = vadd.f32 %v874_v10, %v861_v7 }
 0x26e   :  { %v906_v6 = vpack.c.bf16 %v901_v4, %v873_v3 }
 0x270   :  { %910 = vst [vmem:[#allocation13 + $0x8] sm:$0xff] %v906_v6 }
 0x271   :  { %v888_v8 = vpop.f32.mrf.mxu2  ;;  %v902_v11 = vpop.f32.mrf.mxu3 }
 0x272   :  { %v889_v9 = vadd.f32 %v888_v8, %v468_v61 }
 0x274   :  { %v903_v13 = vadd.f32 %v902_v11, %v889_v9 }
 0x276   :  { %v908_v14 = vpack.c.bf16 %v903_v13, %v875_v12 }
 0x278   :  { %912 = vst [vmem:[#allocation13 + $0x18] sm:$0xff] %v908_v14 }
 0x279   :  { %925 = dma.vmem_to_hbm [thread:$0]  %s918_s22, 512, %s920_s24, [#allocation4], %s1589_s20, %s1589_s20, %s1590_s21  }
 0x27a   :  { %1577 = dma.done.wait [#allocation4], 512  }
 0x27b   :  { %1578 = vsyncadd [#allocation4], 4294966784 }
 0x27c   :  { %930 = vsyncpa [#allocation3], 1 }
 0x27d   :  { %931 = vsyncpa [#allocation6], 1 }
 0x27e   :  { %932 = vsyncpa [#allocation9], 1 }
 0x27f   :  { %933 = vsyncpa [#allocation12], 1 }
 0x280   :  { %934 = vsyncpa [#allocation4], 1 }

</bundles_post_ra>
